<compile_context>
chip_gen: v7x
topology: tpu7x:2x2x1
jax: 0.10.0
libtpu: 0.0.40
codegen_flags: <defaults>
</compile_context>

<pallas_src>
import jax
import jax.numpy as jnp
from jax.experimental import pallas as pl
from jax.experimental.pallas import tpu as pltpu

C_MID = 32          # hidden channels of each simplified encoder conv
FEAT = 64           # per-modality feature dim (SMTCNN adds 64 per modality)
LANE = 128          # TPU lane width used to pad the fused K axis

MODALITIES = ('rgb', 'depth', 'semantic')
SCALES = {'rgb': 1.0 / 255.0, 'depth': 1.0, 'semantic': 1.0 / 255.0}


# ----------------------------- Pallas kernel ------------------------------ #
def _smt_fused_kernel(p_ref, wc_ref, bc_ref, wf_ref, bf_ref, o_ref):
    # p_ref : (HW, KPAD)        bf16  im2col patches of one batch element,
    #                                 all modalities concatenated on K
    # wc_ref: (KPAD, 3*C_MID)   bf16  block-diagonal conv weights (/255 folded in)
    # bc_ref: (1, 3*C_MID)      f32   conv bias
    # wf_ref: (3*C_MID, 3*FEAT) f32   block-diagonal fc weights (1/HW folded in)
    # bf_ref: (1, 3*FEAT)       f32   fc bias
    # o_ref : (1, 3*FEAT)       f32   fused per-batch features (rgb|depth|sem)
    h = jnp.dot(p_ref[...], wc_ref[...], preferred_element_type=jnp.float32)
    h = jnp.maximum(h + bc_ref[...], 0.0)                       # conv bias + ReLU
    # Global-average pool as an MXU ones-matmul (1/HW already folded into wf).
    ones = jnp.ones((1, h.shape[0]), jnp.float32)
    pooled = jnp.dot(ones, h, preferred_element_type=jnp.float32)        # (1, 96)
    o_ref[...] = (jnp.dot(pooled, wf_ref[...], preferred_element_type=jnp.float32)
                  + bf_ref[...])                                          # (1, 192)


def smt_fused_call(patches, wc, bc, wf, bf):
    """patches: (N, HW, KPAD) bf16 -> (N, 3*FEAT) f32, one pallas_call."""
    N, HW, K = patches.shape
    CM = wc.shape[1]
    FO = wf.shape[1]
    out = pl.pallas_call(
        _smt_fused_kernel,
        out_shape=jax.ShapeDtypeStruct((N, 1, FO), jnp.float32),
        grid=(N,),
        in_specs=[
            pl.BlockSpec((None, HW, K), lambda n: (n, 0, 0)),   # squeeze batch dim
            pl.BlockSpec((K, CM), lambda n: (0, 0)),
            pl.BlockSpec((1, CM), lambda n: (0, 0)),
            pl.BlockSpec((CM, FO), lambda n: (0, 0)),
            pl.BlockSpec((1, FO), lambda n: (0, 0)),
        ],
        out_specs=pl.BlockSpec((None, 1, FO), lambda n: (n, 0, 0)),
        compiler_params=pltpu.CompilerParams(dimension_semantics=("parallel",)),
    )(patches, wc, bc, wf, bf)
    return out.reshape(N, FO)


# ------------------------------- glue (JAX) -------------------------------- #
def im2col_3x3(x_nhwc):
    """3x3, stride 1, pad 1 patch extraction. (N,H,W,C) -> (N, H*W, 9*C)."""
    N, H, W, C = x_nhwc.shape
    xp = jnp.pad(x_nhwc, ((0, 0), (1, 1), (1, 1), (0, 0)))
    cols = []
    for kh in range(3):
        for kw in range(3):
            cols.append(xp[:, kh:kh + H, kw:kw + W, :])
    patches = jnp.concatenate(cols, axis=-1)       # taps ordered [kh, kw, ci]
    return patches.reshape(N, H * W, 9 * C)


def convert_semantics_to_rgb(semantics, palette):
    """Semantic IDs -> RGB via a 40-color palette (torch.take equivalent)."""
    ids = semantics.astype(jnp.int32) % 40
    r = jnp.take(palette[:, 0], ids)
    g = jnp.take(palette[:, 1], ids)
    b = jnp.take(palette[:, 2], ids)
    return jnp.stack([r, g, b], axis=-1)


def _kaiming_normal(key, shape, fan_in):
    gain = 2.0 ** 0.5  # nn.init.calculate_gain('relu')
    std = gain / (fan_in ** 0.5)
    return jax.random.normal(key, shape, jnp.float32) * std


def make_encoder_params(key, cin):
    """Deterministic parameters for one modality encoder (biases = 0)."""
    k1, k2 = jax.random.split(key)
    # conv weights in PyTorch layout (Cout, Cin, 3, 3), kaiming fan_in = Cin*9
    wc_t = _kaiming_normal(k1, (C_MID, cin, 3, 3), cin * 9)
    wc = jnp.transpose(wc_t, (2, 3, 1, 0)).reshape(9 * cin, C_MID)  # im2col layout
    # linear weights in PyTorch layout (out, in), kaiming fan_in = C_MID
    wf_t = _kaiming_normal(k2, (FEAT, C_MID), C_MID)
    wf = wf_t.T
    return wc, wf


def build_fused_params(per_mod_params, hw):
    """Block-diagonal fused weights with /255 and 1/HW folded in (biases = 0)."""
    n_mod = len(MODALITIES)
    k_sizes = [per_mod_params[m][0].shape[0] for m in MODALITIES]
    k_tot = sum(k_sizes)
    kpad = max(LANE, -(-k_tot // LANE) * LANE)
    wc = jnp.zeros((kpad, n_mod * C_MID), jnp.float32)
    wf = jnp.zeros((n_mod * C_MID, n_mod * FEAT), jnp.float32)
    k_off = 0
    for i, m in enumerate(MODALITIES):
        wc_m, wf_m = per_mod_params[m]
        km = wc_m.shape[0]
        # fold the input /255 (or 1.0) scale into the conv weights
        wc = wc.at[k_off:k_off + km, i * C_MID:(i + 1) * C_MID].set(wc_m * SCALES[m])
        # fold the 1/HW of the global-average pool into the fc weights
        wf = wf.at[i * C_MID:(i + 1) * C_MID, i * FEAT:(i + 1) * FEAT].set(wf_m / hw)
        k_off += km
    bc = jnp.zeros((1, n_mod * C_MID), jnp.float32)   # SMTCNN inits biases to 0
    bf = jnp.zeros((1, n_mod * FEAT), jnp.float32)
    return wc.astype(jnp.bfloat16), bc, wf, bf, kpad, k_tot


def smt_cnn_forward(observations, fused_params, palette):
    """SMTCNN.forward: rgb + depth + semantic(+object) -> (N, 192) features."""
    wc, bc, wf, bf, kpad, k_tot = fused_params

    rgb = observations['rgb'].astype(jnp.float32)
    depth = observations['depth'].astype(jnp.float32)
    sem_rgb = convert_semantics_to_rgb(observations['semantic'], palette).astype(jnp.float32)
    sem = jnp.concatenate(
        [sem_rgb, observations['semantic_object'].astype(jnp.float32)], axis=-1)

    # One im2col per modality, concatenated on K (matching the block-diagonal
    # weight layout), padded to a lane-aligned width and cast to bf16.
    patches = jnp.concatenate(
        [im2col_3x3(rgb), im2col_3x3(depth), im2col_3x3(sem)], axis=-1)
    patches = jnp.pad(patches, ((0, 0), (0, 0), (0, kpad - k_tot))).astype(jnp.bfloat16)

    return smt_fused_call(patches, wc, bc, wf, bf)   # (N, 64*3) = feature_dims


# --------------------------------- main ------------------------------------ #
if __name__ == "__main__":
    key = jax.random.PRNGKey(0)
    kpal, kr, kd, ks, kso = jax.random.split(key, 5)

    N, H, W = 2, 16, 16
    rgb = jax.random.randint(kr, (N, H, W, 3), 0, 256).astype(jnp.float32)
    depth = jax.random.uniform(kd, (N, H, W, 1), jnp.float32)
    semantic = jax.random.randint(ks, (N, H, W), 0, 80)                      # int class ids
    semantic_object = jax.random.randint(kso, (N, H, W, 3), 0, 256).astype(jnp.float32)
    # synthetic deterministic stand-in for d3_40_colors_rgb
    palette = jax.random.randint(kpal, (40, 3), 0, 256).astype(jnp.int32)

    per_mod = {
        'rgb': make_encoder_params(jax.random.fold_in(key, 1), 3),
        'depth': make_encoder_params(jax.random.fold_in(key, 2), 1),
        'semantic': make_encoder_params(jax.random.fold_in(key, 3), 6),
    }
    fused_params = build_fused_params(per_mod, hw=H * W)

    obs = {
        'rgb': rgb,
        'depth': depth,
        'semantic': semantic,
        'semantic_object': semantic_object,
    }

    feats = smt_cnn_forward(obs, fused_params, palette)
    feats = jax.block_until_ready(feats)
    assert feats.shape == (N, 3 * FEAT), feats.shape
    assert bool(jnp.all(jnp.isfinite(feats)))
    print("KERNEL_OK")
</pallas_src>

<mosaic_0001>
module attributes {stable_mosaic.version = 11 : i64} {
  func.func @_smt_fused_kernel(%arg0: i32, %arg1: memref<1x256x128xbf16, #tpu.memory_space<vmem>>, %arg2: memref<128x96xbf16, #tpu.memory_space<vmem>>, %arg3: memref<1x96xf32, #tpu.memory_space<vmem>>, %arg4: memref<96x192xf32, #tpu.memory_space<vmem>>, %arg5: memref<1x192xf32, #tpu.memory_space<vmem>>, %arg6: memref<1x1x192xf32, #tpu.memory_space<vmem>>) attributes {dimension_semantics = [#tpu.dimension_semantics<parallel>], iteration_bounds = array<i64: 2>, scalar_prefetch = 0 : i64, scratch_operands = 0 : i64, tpu.core_type = #tpu.core_type<tc>, window_params = [{transform_indices = @transform_0, window_bounds = array<i64: 1, 256, 128>}, {pipeline_mode = #tpu.pipeline_mode<synchronous>, transform_indices = @transform_1, window_bounds = array<i64: 128, 96>}, {pipeline_mode = #tpu.pipeline_mode<synchronous>, transform_indices = @transform_2, window_bounds = array<i64: 1, 96>}, {pipeline_mode = #tpu.pipeline_mode<synchronous>, transform_indices = @transform_3, window_bounds = array<i64: 96, 192>}, {pipeline_mode = #tpu.pipeline_mode<synchronous>, transform_indices = @transform_4, window_bounds = array<i64: 1, 192>}, {transform_indices = @transform_5, window_bounds = array<i64: 1, 1, 192>}]} {
    %c0 = arith.constant 0 : index
    %c0_0 = arith.constant 0 : index
    %c0_1 = arith.constant 0 : index
    %0 = vector.load %arg1[%c0, %c0_0, %c0_1] : memref<1x256x128xbf16, #tpu.memory_space<vmem>>, vector<1x256x128xbf16>
    %1 = vector.shape_cast %0 : vector<1x256x128xbf16> to vector<256x128xbf16>
    %c0_2 = arith.constant 0 : index
    %c0_3 = arith.constant 0 : index
    %2 = vector.load %arg2[%c0_2, %c0_3] : memref<128x96xbf16, #tpu.memory_space<vmem>>, vector<128x96xbf16>
    %cst = arith.constant dense<0.000000e+00> : vector<256x96xf32>
    %3 = tpu.matmul %1, %2, %cst {dimension_numbers = #tpu.dot_dimension_numbers<[1], [0], [0], [1], [0, 0, 1, 1], [], []>} : vector<256x128xbf16>, vector<128x96xbf16>, vector<256x96xf32> -> vector<256x96xf32>
    %c0_4 = arith.constant 0 : index
    %c0_5 = arith.constant 0 : index
    %4 = vector.load %arg3[%c0_4, %c0_5] : memref<1x96xf32, #tpu.memory_space<vmem>>, vector<1x96xf32>
    %5 = vector.broadcast %4 : vector<1x96xf32> to vector<256x96xf32>
    %6 = arith.addf %3, %5 : vector<256x96xf32>
    %cst_6 = arith.constant 0.000000e+00 : f32
    %7 = vector.broadcast %cst_6 : f32 to vector<256x96xf32>
    %8 = arith.maximumf %6, %7 : vector<256x96xf32>
    %cst_7 = arith.constant 1.000000e+00 : f32
    %9 = vector.broadcast %cst_7 : f32 to vector<1x256xf32>
    %cst_8 = arith.constant dense<0.000000e+00> : vector<1x96xf32>
    %10 = tpu.matmul %9, %8, %cst_8 {dimension_numbers = #tpu.dot_dimension_numbers<[1], [0], [0], [1], [0, 0, 1, 1], [], []>} : vector<1x256xf32>, vector<256x96xf32>, vector<1x96xf32> -> vector<1x96xf32>
    %c0_9 = arith.constant 0 : index
    %c0_10 = arith.constant 0 : index
    %11 = vector.load %arg4[%c0_9, %c0_10] : memref<96x192xf32, #tpu.memory_space<vmem>>, vector<96x192xf32>
    %cst_11 = arith.constant dense<0.000000e+00> : vector<1x192xf32>
    %12 = tpu.matmul %10, %11, %cst_11 {dimension_numbers = #tpu.dot_dimension_numbers<[1], [0], [0], [1], [0, 0, 1, 1], [], []>} : vector<1x96xf32>, vector<96x192xf32>, vector<1x192xf32> -> vector<1x192xf32>
    %c0_12 = arith.constant 0 : index
    %c0_13 = arith.constant 0 : index
    %13 = vector.load %arg5[%c0_12, %c0_13] : memref<1x192xf32, #tpu.memory_space<vmem>>, vector<1x192xf32>
    %14 = arith.addf %12, %13 : vector<1x192xf32>
    %c0_14 = arith.constant 0 : index
    %c0_15 = arith.constant 0 : index
    %c0_16 = arith.constant 0 : index
    %15 = vector.load %arg6[%c0_14, %c0_15, %c0_16] : memref<1x1x192xf32, #tpu.memory_space<vmem>>, vector<1x1x192xf32>
    %16 = vector.shape_cast %15 : vector<1x1x192xf32> to vector<1x192xf32>
    %17 = vector.shape_cast %14 : vector<1x192xf32> to vector<1x1x192xf32>
    tpu.vector_store %arg6[%c0_14, %c0_15, %c0_16], %17 {strides = array<i32>} : memref<1x1x192xf32, #tpu.memory_space<vmem>>, vector<1x1x192xf32>,
    return
  }
  func.func @transform_0(%arg0: i32) -> (i32, i32, i32) {
    %c0_i32 = arith.constant 0 : i32
    %c0_i32_0 = arith.constant 0 : i32
    %c0_i32_1 = arith.constant 0 : i32
    return %arg0, %c0_i32, %c0_i32_0 : i32, i32, i32
  }
  func.func @transform_1(%arg0: i32) -> (i32, i32) {
    %c0_i32 = arith.constant 0 : i32
    %c0_i32_0 = arith.constant 0 : i32
    %c0_i32_1 = arith.constant 0 : i32
    return %c0_i32, %c0_i32_0 : i32, i32
  }
  func.func @transform_2(%arg0: i32) -> (i32, i32) {
    %c0_i32 = arith.constant 0 : i32
    %c0_i32_0 = arith.constant 0 : i32
    %c0_i32_1 = arith.constant 0 : i32
    return %c0_i32, %c0_i32_0 : i32, i32
  }
  func.func @transform_3(%arg0: i32) -> (i32, i32) {
    %c0_i32 = arith.constant 0 : i32
    %c0_i32_0 = arith.constant 0 : i32
    %c0_i32_1 = arith.constant 0 : i32
    return %c0_i32, %c0_i32_0 : i32, i32
  }
  func.func @transform_4(%arg0: i32) -> (i32, i32) {
    %c0_i32 = arith.constant 0 : i32
    %c0_i32_0 = arith.constant 0 : i32
    %c0_i32_1 = arith.constant 0 : i32
    return %c0_i32, %c0_i32_0 : i32, i32
  }
  func.func @transform_5(%arg0: i32) -> (i32, i32, i32) {
    %c0_i32 = arith.constant 0 : i32
    %c0_i32_0 = arith.constant 0 : i32
    %c0_i32_1 = arith.constant 0 : i32
    return %arg0, %c0_i32, %c0_i32_0 : i32, i32, i32
  }
}

</mosaic_0001>

<bundles_post_ra>
// kernel: tpu_custom_call.1
= control target key start
LH: loop header
LB: loop body
LE: loop exit
PB: predicated region body
PF: predicated region fallthrough
CT: control target
= control target key end

     0   :  { %10 = vsyncpa [#allocation3], 0  ;;  %s1723_s0 = inlined_call_operand.hbm [shape: bf16[2,256,128], index: 0, kind: input, shape index: {}]   ;;  %s1724_s1 = inlined_call_operand.vmem [shape: bf16[128,96], index: 1, kind: input, shape index: {}]   ;;  %s1725_s2 = inlined_call_operand.vmem [shape: f32[1,96], index: 2, kind: input, shape index: {}]   ;;  %s1726_s3 = inlined_call_operand.hbm [shape: f32[96,192], index: 3, kind: input, shape index: {}]   ;;  %s1727_s4 = inlined_call_operand.vmem [shape: f32[1,192], index: 4, kind: input, shape index: {}]   ;;  %s1728_s5 = inlined_call_operand.hbm [shape: f32[2,1,192], index: 5, kind: output, shape index: {}]  }
   0x1   :  { %12 = vsyncpa [#allocation3 + $0x1], 0 }
   0x2   :  { %13 = vsyncpa [#allocation6], 0 }
   0x3   :  { %14 = vsyncpa [#allocation4], 0 }
   0x4   :  { %16 = vsyncpa [#allocation4 + $0x1], 0  ;;  %s1415_s18 = smov 0   ;;  %s1417_s19 = smov 0  }
   0x5   :  { %s1419_s20 = smov 0   ;;  %s1421_s21 = smov 0  }
   0x6 LB: > { %s1436_s22 = sadd.s32 4294967295, %s1373_s21   ;;  %s950_s23 = sadd.s32 4294967294, %s1373_s21   ;;  %s1373_s21 = sphi %s1421_s21, %s1748_s21   ;;  %s1369_s20 = sphi %s1419_s20, %s1747_s20   ;;  %s1365_s19 = sphi %s1417_s19, %s1746_s19   ;;  %s1361_s18 = sphi %s1415_s18, %s1745_s18  }
   0x7   : > { %p42_p0 = scmp.ne.s32.totalorder %s1365_s19, %s1361_s18  ;;  %p1729_p1 = scmp.eq.s32.totalorder %s1436_s22, 0 }
   0x8   : > { %p156_p3 = scmp.eq.s32.totalorder %s950_s23, 1  ;;  %p951_p5 = scmp.ge.s32.totalorder %s1373_s21, 1 }
   0x9   : > { %p1445_p4 = por %p1729_p1, %p42_p0  ;;  %p163_p7 = scmp.lt.s32.totalorder %s1373_s21, 3 }
   0xa   : > { %p1450_p6 = por %p156_p3, %p42_p0  ;;  %s1375_s27 = smov [#allocation5]  }
   0xb   : > { %s1732_s24 = scalar_select %p1445_p4, 1, 0 }
   0xc   : > { %s1733_s25 = scalar_select %p1450_p6, 1, 0 }
   0xd   : > { %p1455_p8 = pnand %p951_p5, %p163_p7  ;;  %s181_s28 = sshll.u32 %s1375_s27, 4  ;;  %s1459_s28 = int_to_ptr.vmem [resolvable:$true] %s181_s28 }
   0xe   : > { %s1471_s30 = sadd.s32 1, %s1373_s21   ;;  %s29_s6 = sadd.s32 1, %s1369_s20 }
   0xf   : > { %s1734_s26 = scalar_select %p1455_p8, 1, 0 }
  0x10   : > { %p1165_p9 = pneg %p1455_p8  ;;  %s26_s7 = ssub.s32 %s1373_s21, %s1471_s30 }
  0x11   : > { %s1245_s10 = scalar_lea.hbm %s1726_s3, 3072 }
  0x12   : > { %p1466_p11 = pnand %p1165_p9, %p1729_p1  ;;  %p1246_p12 = scmp.ne.s32.totalorder %s1726_s3, %s1245_s10 }
  0x13   : > { %p1252_p5 = scmp.lt.u32.totalorder %s1245_s10, %s1726_s3 }
  0x14   : > { %p1247_p13 = pneg %p1466_p11 }
  0x16   : > { %p1248_p0 = pnand %p1247_p13, %p1246_p12 }
  0x18   : > { %p1249_p3 = pneg %p1248_p0 }
  0x1a   : > { %p1254_p7 = pnand %p1252_p5, %p1249_p3 }
  0x1c   : > { %1257 = shalt.err (!%p1254_p7)
}
  0x1d   : > { %s1258_s15 = scalar_lea.vmem %s1459_s28, 3072  ;;  %p1266_p2 = scmp.lt.s32.totalorder %s1459_s28, %s1459_s28 }
  0x1e   : > { %p1259_p9 = scmp.ne.s32.totalorder %s1459_s28, %s1258_s15  ;;  %p1267_p6 = scmp.lt.s32.totalorder %s1258_s15, %s1258_s15 }
  0x20   : > { %p1261_p10 = pnand %p1259_p9, %p1247_p13  ;;  %p1268_p4 = por %p1267_p6, %p1266_p2 }
  0x22   : > { %p1262_p1 = pneg %p1261_p10 }
  0x24   : > { %p1269_p8 = pnand %p1268_p4, %p1262_p1 }
  0x26   : > { %1272 = shalt.err (!%p1269_p8)
}
  0x27   : > { %s1376_s16 = smov 256   ;;  %s1377_s17 = smov 16  }
  0x28   : > { %1168 = dma.hbm_to_vmem [thread:$0]  (!%p1466_p11), %s1726_s3, 3072, %s1459_s28, [#allocation6], %s1376_s16, %s1376_s16, %s1377_s17  }
  0x29   : > { %p27_p2 = scmp.eq.s32.totalorder %s26_s7, 0  ;;  %p36_p1 = scmp.ne.s32.totalorder %s1369_s20, %s1365_s19 }
  0x2a   : > { %p37_p4 = scmp.eq.s32.totalorder %s1373_s21, 0  ;;  %p1178_p6 = scmp.lt.s32.totalorder %s1373_s21, 2 }
  0x2b   : > { %s1502_s8 = scalar_select %p27_p2, %s1369_s20, %s29_s6  }
  0x2c   : > { %p38_p8 = por %p37_p4, %p36_p1  ;;  %p1736_p10 = scmp.eq.s32.totalorder %s1436_s22, 1 }
  0x2d   : > { %s198_s10 = sand.u32 1, %s1369_s20   ;;  %s992_s11 = sshll.u32 %s1373_s21, 11 }
  0x2e   : > { %p1506_p12 = por %p1736_p10, %p36_p1  ;;  %s954_s12 = sshll.u32 %s198_s10, 7 }
  0x2f   : > { %s1515_s14 = scalar_lea.hbm %s1723_s0, %s992_s11  ;;  %s202_s28 = scalar_lea.vmem [#allocation2], %s954_s12 }
  0x30   : > { %s209_s6 = sshll.u32 %s202_s28, 4  ;;  %p1517_p11 = pnand %p1178_p6, %p38_p8  ;;  %s1521_s6 = int_to_ptr.vmem [resolvable:$true] %s209_s6 }
  0x31   : > { %s1523_s15 = scalar_lea.sflag [#allocation3], %s198_s10  ;;  %s1273_s16 = scalar_lea.hbm %s1515_s14, 2048 }
  0x32   : > { %p1274_p13 = scmp.ne.s32.totalorder %s1515_s14, %s1273_s16  ;;  %p1275_p0 = pneg %p1517_p11 }
  0x33   : > { %s1278_s27 = scalar_lea.hbm %s1723_s0, 4096  ;;  %p1279_p7 = scmp.lt.u32.totalorder %s1515_s14, %s1723_s0 }
  0x34   : > { %p1276_p3 = pnand %p1275_p0, %p1274_p13  ;;  %p1280_p9 = scmp.lt.u32.totalorder %s1278_s27, %s1273_s16 }
  0x35   : > { %p1282_p1 = scmp.lt.u32.totalorder %s1273_s16, %s1515_s14 }
  0x36   : > { %p1277_p5 = pneg %p1276_p3  ;;  %p1281_p2 = por %p1280_p9, %p1279_p7 }
  0x38   : > { %p1283_p4 = por %p1282_p1, %p1281_p2 }
  0x3a   : > { %p1284_p6 = pnand %p1283_p4, %p1277_p5 }
  0x3c   : > { %1287 = shalt.err (!%p1284_p6)
}
  0x3d   : > { %s1288_s10 = scalar_lea.vmem %s1521_s6, 2048  ;;  %s1378_s29 = smov [#allocation2]  }
  0x3e   : > { %p1289_p8 = scmp.ne.s32.totalorder %s1521_s6, %s1288_s10  ;;  %s1293_s13 = sshll.u32 %s1378_s29, 4  ;;  %s1294_s13 = int_to_ptr.vmem [resolvable:$false] %s1293_s13 }
  0x3f   : > { %s1295_s28 = scalar_lea.vmem %s1294_s13, 4096  ;;  %p1296_p3 = scmp.lt.s32.totalorder %s1521_s6, %s1294_s13 }
  0x40   : > { %p1291_p10 = pnand %p1289_p8, %p1275_p0  ;;  %p1297_p7 = scmp.lt.s32.totalorder %s1295_s28, %s1288_s10 }
  0x42   : > { %p1292_p13 = pneg %p1291_p10  ;;  %p1298_p9 = por %p1297_p7, %p1296_p3 }
  0x44   : > { %p1299_p2 = pnand %p1298_p9, %p1292_p13 }
  0x46   : > { %1302 = shalt.err (!%p1299_p2)
}
  0x47   : > { %s1379_s16 = smov 64   ;;  %s1380_s17 = smov 4  }
  0x48   : > { %1172 = dma.hbm_to_vmem [thread:$0]  (!%p1517_p11), %s1515_s14, 2048, %s1521_s6, %s1523_s15, %s1379_s16, %s1379_s16, %s1380_s17  }
  0x49   : > { %p1739_p0 = scmp.ne.s32.totalorder %s1734_s26, 0 }
  0x4a   : > { %s1554_s23 = sand.u32 (!%p1739_p0), 1, %s1365_s19   ;;  %p1740_p5 = scmp.ne.s32.totalorder (!%p1739_p0), %s1732_s24, 0 }
  0x4b   : > { %221 = sbr.rel (%p1739_p0) target bundleno = 854 (0x356), region = 40  ;;  %s958_s27 = sshll.u32 (!%p1739_p0), %s1554_s23, 7 }
  0x4c   : > { %s224_s11 = scalar_lea.sflag (!%p1739_p0), [#allocation3], %s1554_s23  ;;  %s1558_s12 = scalar_lea.vmem (!%p1739_p0), [#allocation2], %s958_s27 }
  0x52   : > { %1348 = dma.done.wait (%p1740_p5), %s224_s11, 2048  }
  0x53   : > { %1350 = vsyncadd (%p1740_p5), %s224_s11, 4294965248  ;;  %p1741_p11 = scmp.eq.s32.totalorder %s1436_s22, 0 }
  0x55   : > { %1352 = dma.done.wait (%p1741_p11), [#allocation6], 3072   ;;  %p1742_p1 = pmov %p1741_p11 }
  0x56   : > { %v1221_v0 = vld [vmem:[%s1724_s1] sm:$0xff]   ;;  %v1222_v1 = vld [vmem:[%s1724_s1 + $0x8] sm:$0xff]   ;;  %v1223_v2 = vld [vmem:[%s1724_s1 + $0x10] sm:$0xff]   ;;  %v1381_v24 = vmov 1.0   ;;  %vm757_vm0 = vcmask 785408   ;;  %s960_s15 = sshll.u32 %s1554_s23, 1 }
  0x57   : > { %1354 = vsyncadd (%p1742_p1), [#allocation6], 4294964224  ;;  %1053 = vmatprep.subr.bf16.mxu0 %v1221_v0  ;;  %v1224_v3 = vld [vmem:[%s1724_s1 + $0x18] sm:$0xff]   ;;  %v1229_v4 = vld [vmem:[%s1558_s12] sm:$0xff]   ;;  %715 = vmatprep.mubr.f32.mxu1 %v1381_v24  ;;  %s993_s10 = sshll.u32 %s1436_s22, 5  ;;  %s257_s29 = scalar_lea.vmem [#allocation7], %s960_s15 }
  0x58   : > { %1054 = vmatpush3.bf16.msra.mxu0 %v1221_v0  ;;  %1069 = vmatprep.mubr.bf16.mxu0 %v1229_v4  ;;  %v1225_v5 = vld [vmem:[%s1724_s1 + $0x20] sm:$0xff]   ;;  %v1226_v6 = vld [vmem:[%s1724_s1 + $0x28] sm:$0xff]   ;;  %v1227_v7 = vld [vmem:[%s1724_s1 + $0x30] sm:$0xff]   ;;  %s870_s13 = sshll.u32 %s257_s29, 4  ;;  %s1679_s17 = scalar_lea.hbm %s1728_s5, %s993_s10  ;;  %s1681_s13 = int_to_ptr.vmem [resolvable:$true] %s870_s13 }
  0x59   : > { %1055 = vmatprep.subr.bf16.mxu0 %v1222_v1  ;;  %v1228_v8 = vld [vmem:[%s1724_s1 + $0x38] sm:$0xff]   ;;  %v1230_v9 = vld [vmem:[%s1558_s12 + $0x8] sm:$0xff]   ;;  %v1231_v10 = vld [vmem:[%s1558_s12 + $0x10] sm:$0xff]   ;;  %s856_s27 = scalar_lea.sflag [#allocation4], %s1554_s23  ;;  %s1303_s11 = scalar_lea.vmem %s1681_s13, 32 }
  0x5a   : > { %v1232_v11 = vld [vmem:[%s1558_s12 + $0x18] sm:$0xff]   ;;  %v1233_v12 = vld [vmem:[%s1558_s12 + $0x20] sm:$0xff]   ;;  %v1234_v13 = vld [vmem:[%s1558_s12 + $0x28] sm:$0xff]   ;;  %p1304_p4 = scmp.ne.s32.totalorder %s1681_s13, %s1303_s11  ;;  %s1384_s22 = smov [#allocation7]  }
  0x5b   : > { %v1235_v14 = vld [vmem:[%s1558_s12 + $0x30] sm:$0xff]   ;;  %v1236_v15 = vld [vmem:[%s1558_s12 + $0x38] sm:$0xff]   ;;  %v1237_v16 = vld [vmem:[%s1558_s12 + $0x40] sm:$0xff]   ;;  %s1307_s26 = sshll.u32 %s1384_s22, 4  ;;  %s1308_s26 = int_to_ptr.vmem [resolvable:$false] %s1307_s26 }
  0x5c   : > { %1056 = vmatpush3.bf16.msra.mxu0 %v1222_v1  ;;  %v1238_v17 = vld [vmem:[%s1558_s12 + $0x48] sm:$0xff]   ;;  %v1239_v18 = vld [vmem:[%s1558_s12 + $0x50] sm:$0xff]   ;;  %v1240_v19 = vld [vmem:[%s1558_s12 + $0x58] sm:$0xff]   ;;  %p1305_p6 = pnand %p1304_p4, %p1506_p12  ;;  %s1309_s14 = scalar_lea.vmem %s1308_s26, 64 }
  0x5d   : > { %1057 = vmatprep.subr.bf16.mxu0 %v1223_v2  ;;  %v1241_v20 = vld [vmem:[%s1558_s12 + $0x60] sm:$0xff]   ;;  %v1242_v21 = vld [vmem:[%s1558_s12 + $0x68] sm:$0xff]   ;;  %v1243_v22 = vld [vmem:[%s1558_s12 + $0x70] sm:$0xff]   ;;  %p1310_p10 = scmp.lt.s32.totalorder %s1681_s13, %s1308_s26  ;;  %p1311_p13 = scmp.lt.s32.totalorder %s1309_s14, %s1303_s11 }
  0x5e   : > { %v1244_v23 = vld [vmem:[%s1558_s12 + $0x78] sm:$0xff]   ;;  %v1612_v25 = vld [vmem:[%s1725_s2] ss:$0 sm:$0xff]  ;;  %p1306_p8 = pneg %p1305_p6 }
  0x5f   : > { %p1312_p3 = por %p1311_p13, %p1310_p10 }
  0x60   : > { %1058 = vmatpush3.bf16.msra.mxu0 %v1223_v2 }
  0x61   : > { %1059 = vmatprep.subr.bf16.mxu0 %v1224_v3  ;;  %p1313_p7 = pnand %p1312_p3, %p1306_p8 }
  0x64   : > { %1060 = vmatpush3.bf16.msra.mxu0 %v1224_v3 }
  0x65   : > { %1061 = vmatprep.subr.bf16.mxu0 %v1225_v5 }
  0x68   : > { %1062 = vmatpush3.bf16.msra.mxu0 %v1225_v5 }
  0x69   : > { %1063 = vmatprep.subr.bf16.mxu0 %v1226_v6 }
  0x6c   : > { %1064 = vmatpush3.bf16.msra.mxu0 %v1226_v6 }
  0x6d   : > { %1065 = vmatprep.subr.bf16.mxu0 %v1227_v7 }
  0x70   : > { %1066 = vmatpush3.bf16.msra.mxu0 %v1227_v7 }
  0x71   : > { %1067 = vmatprep.subr.bf16.mxu0 %v1228_v8 }
  0x74   : > { %1068 = vmatpush3.bf16.msra.mxu0 %v1228_v8 }
  0x77   : > { %1070 = vmatmul.mubr.bf16.vlgmr.msra.gmra.mrb[0].mxu0 %v1230_v9 }
  0x78   : > { %1073 = vmatprep.mubr.bf16.mxu0 %v1231_v10 }
  0x7f   : > { %1074 = vmatmul.mubr.bf16.gmra.mrb[4].mxu0 %v1232_v11 }
  0x80   : > { %1077 = vmatprep.mubr.bf16.mxu0 %v1233_v12 }
  0x87   : > { %1078 = vmatmul.mubr.bf16.gmra.mrb[8].mxu0 %v1234_v13 }
  0x88   : > { %1081 = vmatprep.mubr.bf16.mxu0 %v1235_v14 }
  0x8f   : > { %1082 = vmatmul.mubr.bf16.gmra.mrb[12].mxu0 %v1236_v15 }
  0x90   : > { %1085 = vmatprep.mubr.bf16.mxu0 %v1237_v16 }
  0x97   : > { %1086 = vmatmul.mubr.bf16.gmra.mrb[16].mxu0 %v1238_v17 }
  0x98   : > { %1089 = vmatprep.mubr.bf16.mxu0 %v1239_v18 }
  0x9f   : > { %1090 = vmatmul.mubr.bf16.gmra.mrb[20].mxu0 %v1240_v19 }
  0xa0   : > { %1093 = vmatprep.mubr.bf16.mxu0 %v1241_v20 }
  0xa7   : > { %1094 = vmatmul.mubr.bf16.gmra.mrb[24].mxu0 %v1242_v21 }
  0xa8   : > { %1097 = vmatprep.mubr.bf16.mxu0 %v1243_v22 }
  0xaf   : > { %1098 = vmatmul.mubr.bf16.gmra.mrb[28].mxu0 %v1244_v23 }
 0x14a   : > { %v1071_v26 = vpop.f32.mrb[0].mxu0 }
 0x14b   : > { %v501_v27 = vadd.f32 %v1071_v26, %v1612_v25  ;;  %v492_v28 = vpop.f32.mrb[1].mxu0 }
 0x14c   : > { %v493_v29 = vadd.f32 %v1612_v25, %v492_v28  ;;  %v1072_v30 = vpop.f32.mrb[2].mxu0 }
 0x14d   : > { %v504_v31 = vadd.f32 %v1072_v30, %v1612_v25  ;;  %v495_v32 = vpop.f32.mrb[3].mxu0  ;;  %v621_v34 = vmax.f32 %v501_v27, 0.0 }
 0x14e   : > { %v496_v33 = vadd.f32 %v1612_v25, %v495_v32  ;;  %v619_v36 = vmax.f32 %v493_v29, 0.0 }
 0x14f   : > { %v622_v35 = vmax.f32 %v504_v31, 0.0 }
 0x150   : > { %v620_v37 = vmax.f32 %v496_v33, 0.0 }
 0x151   : > { %v1618_v38 = vpack.c.bf16 %v622_v35, %v621_v34 }
 0x152   : > { %v1075_v39 = vpop.f32.mrb[4].mxu0  ;;  %v1620_v40 = vpack.c.bf16 %v620_v37, %v619_v36 }
 0x153   : > { %v517_v41 = vadd.f32 %v1075_v39, %v1612_v25  ;;  %v508_v42 = vpop.f32.mrb[5].mxu0 }
 0x154   : > { %v509_v43 = vadd.f32 %v1612_v25, %v508_v42  ;;  %v1076_v44 = vpop.f32.mrb[6].mxu0 }
 0x155   : > { %v520_v45 = vadd.f32 %v1076_v44, %v1612_v25  ;;  %v511_v46 = vpop.f32.mrb[7].mxu0  ;;  %v625_v48 = vmax.f32 %v517_v41, 0.0 }
 0x156   : > { %v512_v47 = vadd.f32 %v1612_v25, %v511_v46  ;;  %v623_v50 = vmax.f32 %v509_v43, 0.0 }
 0x157   : > { %v626_v49 = vmax.f32 %v520_v45, 0.0 }
 0x158   : > { %v624_v51 = vmax.f32 %v512_v47, 0.0 }
 0x159   : > { %v1626_v52 = vpack.c.bf16 %v626_v49, %v625_v48 }
 0x15a   : > { %v1628_v53 = vpack.c.bf16 %v624_v51, %v623_v50  ;;  %v1079_v54 = vpop.f32.mrb[8].mxu0 }
 0x15b   : > { %v533_v55 = vadd.f32 %v1079_v54, %v1612_v25  ;;  %v524_v56 = vpop.f32.mrb[9].mxu0 }
 0x15c   : > { %v525_v57 = vadd.f32 %v1612_v25, %v524_v56  ;;  %v1080_v58 = vpop.f32.mrb[10].mxu0 }
 0x15d   : > { %v536_v59 = vadd.f32 %v1080_v58, %v1612_v25  ;;  %v527_v60 = vpop.f32.mrb[11].mxu0  ;;  %v629_v62 = vmax.f32 %v533_v55, 0.0 }
 0x15e   : > { %v528_v61 = vadd.f32 %v1612_v25, %v527_v60  ;;  %v627_v0 = vmax.f32 %v525_v57, 0.0 }
 0x15f   : > { %v630_v63 = vmax.f32 %v536_v59, 0.0 }
 0x160   : > { %v628_v1 = vmax.f32 %v528_v61, 0.0 }
 0x161   : > { %v1634_v2 = vpack.c.bf16 %v630_v63, %v629_v62 }
 0x162   : > { %v1636_v3 = vpack.c.bf16 %v628_v1, %v627_v0  ;;  %v1083_v4 = vpop.f32.mrb[12].mxu0 }
 0x163   : > { %v549_v5 = vadd.f32 %v1083_v4, %v1612_v25  ;;  %v540_v6 = vpop.f32.mrb[13].mxu0 }
 0x164   : > { %v541_v7 = vadd.f32 %v1612_v25, %v540_v6  ;;  %v1084_v8 = vpop.f32.mrb[14].mxu0 }
 0x165   : > { %v552_v9 = vadd.f32 %v1084_v8, %v1612_v25  ;;  %v543_v10 = vpop.f32.mrb[15].mxu0  ;;  %v633_v12 = vmax.f32 %v549_v5, 0.0 }
 0x166   : > { %v544_v11 = vadd.f32 %v1612_v25, %v543_v10  ;;  %v631_v14 = vmax.f32 %v541_v7, 0.0 }
 0x167   : > { %v634_v13 = vmax.f32 %v552_v9, 0.0 }
 0x168   : > { %v632_v15 = vmax.f32 %v544_v11, 0.0 }
 0x169   : > { %v1642_v16 = vpack.c.bf16 %v634_v13, %v633_v12 }
 0x16a   : > { %v1644_v17 = vpack.c.bf16 %v632_v15, %v631_v14  ;;  %v1087_v18 = vpop.f32.mrb[16].mxu0  ;;  %v722_v14 = vld [vmem:[#allocation5 + $0x8] sm:$0xff]  ;;  %v724_v15 = vld [vmem:[#allocation5 + $0x18] sm:$0xff] }
 0x16b   : > { %v565_v19 = vadd.f32 %v1087_v18, %v1612_v25  ;;  %v556_v20 = vpop.f32.mrb[17].mxu0  ;;  %v1133_v18 = vpack.c.bf16 %v724_v15, %v722_v14 }
 0x16c   : > { %v557_v21 = vadd.f32 %v1612_v25, %v556_v20  ;;  %v1088_v22 = vpop.f32.mrb[18].mxu0  ;;  %v726_v20 = vld [vmem:[#allocation5 + $0x28] sm:$0xff] }
 0x16d   : > { %v568_v23 = vadd.f32 %v1088_v22, %v1612_v25  ;;  %v559_v26 = vpop.f32.mrb[19].mxu0  ;;  %v637_v28 = vmax.f32 %v565_v19, 0.0  ;;  %v721_v19 = vld [vmem:[#allocation5] sm:$0xff] }
 0x16e   : > { %v560_v27 = vadd.f32 %v1612_v25, %v559_v26  ;;  %v635_v30 = vmax.f32 %v557_v21, 0.0  ;;  %v727_v26 = vld [vmem:[#allocation5 + $0x30] sm:$0xff] }
 0x16f   : > { %v638_v29 = vmax.f32 %v568_v23, 0.0  ;;  %v725_v23 = vld [vmem:[#allocation5 + $0x20] sm:$0xff] }
 0x170   : > { %v636_v31 = vmax.f32 %v560_v27, 0.0  ;;  %v732_v27 = vld [vmem:[#allocation5 + $0x58] sm:$0xff] }
 0x171   : > { %v1105_v32 = vpack.c.bf16 %v638_v29, %v637_v28  ;;  %v1139_v28 = vpack.c.bf16 %v727_v26, %v725_v23  ;;  %v729_v29 = vld [vmem:[#allocation5 + $0x40] sm:$0xff] }
 0x172   : > { %v1091_v33 = vpop.f32.mrb[20].mxu0  ;;  %v1101_v34 = vpack.c.bf16 %v636_v31, %v635_v30  ;;  %v731_v30 = vld [vmem:[#allocation5 + $0x50] sm:$0xff]  ;;  %v734_v31 = vld [vmem:[#allocation5 + $0x68] sm:$0xff] }
 0x173   : > { %v581_v35 = vadd.f32 %v1091_v33, %v1612_v25  ;;  %v572_v36 = vpop.f32.mrb[21].mxu0  ;;  %v1143_v33 = vpack.c.bf16 %v731_v30, %v729_v29 }
 0x174   : > { %v573_v37 = vadd.f32 %v1612_v25, %v572_v36  ;;  %v1092_v39 = vpop.f32.mrb[22].mxu0  ;;  %1102 = vmatprep.subr.bf16.mxu1 %v1101_v34  ;;  %v733_v34 = vld [vmem:[#allocation5 + $0x60] sm:$0xff]  ;;  %v738_v36 = vld [vmem:[#allocation5 + $0x88] sm:$0xff] }
 0x175   : > { %v584_v41 = vadd.f32 %v1092_v39, %v1612_v25  ;;  %v575_v42 = vpop.f32.mrb[23].mxu0  ;;  %1104 = vmatpush3.bf16.msra.mxu1 %v1620_v40  ;;  %v641_v44 = vmax.f32 %v581_v35, 0.0  ;;  %v735_v35 = vld [vmem:[#allocation5 + $0x70] sm:$0xff] }
 0x176   : > { %v576_v43 = vadd.f32 %v1612_v25, %v575_v42  ;;  %1106 = vmatprep.subr.bf16.mxu1 %v1105_v32  ;;  %v639_v46 = vmax.f32 %v573_v37, 0.0  ;;  %v736_v32 = vld [vmem:[#allocation5 + $0x78] sm:$0xff]  ;;  %v1147_v39 = vpack.c.bf16 %v735_v35, %v733_v34  ;;  %v739_v42 = vld [vmem:[#allocation5 + $0x90] sm:$0xff] }
 0x177   : > { %v642_v45 = vmax.f32 %v584_v41, 0.0  ;;  %v740_v37 = vld [vmem:[#allocation5 + $0x98] sm:$0xff]  ;;  %v737_v41 = vld [vmem:[#allocation5 + $0x80] sm:$0xff] }
 0x178   : > { %v640_v47 = vmax.f32 %v576_v43, 0.0  ;;  %v1151_v43 = vpack.c.bf16 %v739_v42, %v737_v41 }
 0x179   : > { %v1113_v48 = vpack.c.bf16 %v642_v45, %v641_v44  ;;  %1108 = vmatpush3.bf16.msra.mxu1 %v1618_v38  ;;  %v742_v44 = vld [vmem:[#allocation5 + $0xa8] sm:$0xff]  ;;  %v744_v45 = vld [vmem:[#allocation5 + $0xb8] sm:$0xff] }
 0x17a   : > { %v1109_v49 = vpack.c.bf16 %v640_v47, %v639_v46  ;;  %v1095_v50 = vpop.f32.mrb[24].mxu0  ;;  %v1153_v46 = vpack.c.bf16 %v744_v45, %v742_v44  ;;  %v741_v47 = vld [vmem:[#allocation5 + $0xa0] sm:$0xff] }
 0x17b   : > { %v597_v51 = vadd.f32 %v1095_v50, %v1612_v25  ;;  %v588_v54 = vpop.f32.mrb[25].mxu0  ;;  %v1382_v50 = vmov 0.0  }
 0x17c   : > { %v589_v55 = vadd.f32 %v1612_v25, %v588_v54  ;;  %v1096_v56 = vpop.f32.mrb[26].mxu0  ;;  %1110 = vmatprep.subr.bf16.mxu1 %v1109_v49 }
 0x17d   : > { %v600_v40 = vadd.f32 %v1096_v56, %v1612_v25  ;;  %v591_v57 = vpop.f32.mrb[27].mxu0  ;;  %1112 = vmatpush3.bf16.msra.mxu1 %v1628_v53  ;;  %v645_v59 = vmax.f32 %v597_v51, 0.0  ;;  %v747_v56 = vlaneseq }
 0x17e   : > { %v592_v58 = vadd.f32 %v1612_v25, %v591_v57  ;;  %1114 = vmatprep.subr.bf16.mxu1 %v1113_v48  ;;  %v643_v38 = vmax.f32 %v589_v55, 0.0  ;;  %v743_v48 = vld [vmem:[#allocation5 + $0xb0] sm:$0xff] }
 0x17f   : > { %v646_v60 = vmax.f32 %v600_v40, 0.0  ;;  %v1155_v49 = vpack.c.bf16 %v743_v48, %v741_v47  ;;  %v748_v40 = vshrl.u32 %v747_v56, 7  ;;  %vm852_vm1 = vcmp.lt.s32.totalorder %v747_v56, 192 }
 0x180   : > { %v644_v61 = vmax.f32 %v592_v58, 0.0  ;;  %v745_v58 = vld [vmem:[%s1727_s4] sm:$0x3] }
 0x181   : > { %v1121_v62 = vpack.c.bf16 %v646_v60, %v645_v59  ;;  %1116 = vmatpush3.bf16.msra.mxu1 %v1626_v52  ;;  %v749_v57 = vsub.s32 0, %v748_v40  ;;  %v753_v59 = vsub.s32 1, %v748_v40  ;;  %v1383_v60 = vmov 1966171168  }
 0x182   : > { %v1117_v63 = vpack.c.bf16 %v644_v61, %v643_v38  ;;  %v1099_v0 = vpop.f32.mrb[28].mxu0  ;;  %v836_v38 = vunpack.c.l.s4 %v1383_v60 }
 0x183   : > { %v613_v1 = vadd.f32 %v1099_v0, %v1612_v25  ;;  %v604_v4 = vpop.f32.mrb[29].mxu0  ;;  %v750_v61 = vrot.slane %v745_v58, %v749_v57 }
 0x184   : > { %v605_v5 = vadd.f32 %v1612_v25, %v604_v4  ;;  %v1100_v6 = vpop.f32.mrb[30].mxu0  ;;  %1118 = vmatprep.subr.bf16.mxu1 %v1117_v63  ;;  %v837_v63 = vunpack.c.0.s8 %v836_v38 }
 0x185   : > { %v616_v53 = vadd.f32 %v1100_v6, %v1612_v25  ;;  %v607_v7 = vpop.f32.mrb[31].mxu0  ;;  %1120 = vmatpush3.bf16.msra.mxu1 %v1636_v3  ;;  %v649_v9 = vmax.f32 %v613_v1, 0.0  ;;  %v723_v3 = vld [vmem:[#allocation5 + $0x10] sm:$0xff] }
 0x186   : > { %v608_v8 = vadd.f32 %v1612_v25, %v607_v7  ;;  %1122 = vmatprep.subr.bf16.mxu1 %v1121_v62  ;;  %v647_v52 = vmax.f32 %v605_v5, 0.0  ;;  %v728_v25 = vld [vmem:[#allocation5 + $0x38] sm:$0xff]  ;;  %v1135_v21 = vpack.c.bf16 %v723_v3, %v721_v19  ;;  %v754_v62 = vrot.slane %v745_v58, %v753_v59 }
 0x187   : > { %v650_v10 = vmax.f32 %v616_v53, 0.0  ;;  %v1137_v22 = vpack.c.bf16 %v728_v25, %v726_v20  ;;  %v840_v6 = vsub.s32 %v837_v63, %v748_v40 }
 0x188   : > { %v648_v11 = vmax.f32 %v608_v8, 0.0 }
 0x189   : > { %v1129_v12 = vpack.c.bf16 %v650_v10, %v649_v9  ;;  %1124 = vmatpush3.bf16.msra.mxu1 %v1634_v2  ;;  %v730_v2 = vld [vmem:[#allocation5 + $0x48] sm:$0xff] }
 0x18a   : > { %v1125_v13 = vpack.c.bf16 %v648_v11, %v647_v52 }
 0x18c   : > { %1126 = vmatprep.subr.bf16.mxu1 %v1125_v13 }
 0x18d   : > { %1128 = vmatpush3.bf16.msra.mxu1 %v1644_v17  ;;  %v1141_v17 = vpack.c.bf16 %v732_v27, %v730_v2 }
 0x18e   : > { %1130 = vmatprep.subr.bf16.mxu1 %v1129_v12 }
 0x191   : > { %1132 = vmatpush3.bf16.msra.mxu1 %v1642_v16  ;;  %v1145_v16 = vpack.c.bf16 %v736_v32, %v734_v31 }
 0x192   : > { %1134 = vmatprep.subr.bf16.mxu1 %v1133_v18 }
 0x194   : > { %716 = vmatmul.mubr.f32.vlgmr.msra.gmra.mrb[0].mxu1 %v1381_v24  ;;  %v1149_v24 = vpack.c.bf16 %v740_v37, %v738_v36 }
 0x195   : > { %1136 = vmatpush1.bf16.msra.mxu1 %v1135_v21  ;;  %825 = vmatprep.mubr.f32.mxu1 %v1382_v50 }
 0x196   : > { %1138 = vmatprep.subr.bf16.mxu1 %v1137_v22 }
 0x199   : > { %1140 = vmatpush1.bf16.msra.mxu1 %v1139_v28 }
 0x19a   : > { %1142 = vmatprep.subr.bf16.mxu1 %v1141_v17 }
 0x19d   : > { %1144 = vmatpush1.bf16.msra.mxu1 %v1143_v33 }
 0x19e   : > { %1146 = vmatprep.subr.bf16.mxu1 %v1145_v16 }
 0x1a1   : > { %1148 = vmatpush1.bf16.msra.mxu1 %v1147_v39 }
 0x1a2   : > { %1150 = vmatprep.subr.bf16.mxu1 %v1149_v24 }
 0x1a5   : > { %1152 = vmatpush1.bf16.msra.mxu1 %v1151_v43 }
 0x1a6   : > { %1154 = vmatprep.subr.bf16.mxu1 %v1153_v46 }
 0x1a9   : > { %1156 = vmatpush1.bf16.msra.mxu1 %v1155_v49 }
 0x267   : > { %v1050_v51 = vpop.f32.mrb[0].mxu1 }
 0x268   : > { %v1051_v54 = vpop.f32.mrb[1].mxu1 }
 0x269   : > { %v1052_v55 = vadd.f32 %v1051_v54, %v1050_v51 }
 0x26b   : > { %986 = vmatmul.mubr.msk.f32.vlgmr.msra.gmra.mrb[2].mxu1 %vm757_vm0, %v1052_v55 }
 0x33e   : > { %v827_v0 = vpop.f32.mrb[2].mxu1 }
 0x33f   : > { %v828_v1 = vadd.f32 %v827_v0, %v750_v61  ;;  %v829_v4 = vpop.f32.mrb[3].mxu1 }
 0x340   : > { %v830_v5 = vadd.f32 %v829_v4, %v754_v62 }
 0x342   : > { %v834_v53 = vcombine.low %v828_v1, %v830_v5 }
 0x344   : > { %v841_v7 = vrot.slane %v834_v53, %v840_v6 }
 0x346   : > { %v848_v8 = vrot.slane %v841_v7, %v840_v6 }
 0x348   : > { %854 = vst.msk [vmem:[%s257_s29] sm:$0x3] %vm852_vm1, %v848_v8 }
 0x349   : > { %1316 = shalt.err (!%p1313_p7)
}
 0x34a   : > { %s1317_s23 = scalar_lea.hbm %s1679_s17, 32  ;;  %s1321_s12 = scalar_lea.hbm %s1728_s5, 64 }
 0x34b   : > { %p1318_p9 = scmp.ne.s32.totalorder %s1679_s17, %s1317_s23  ;;  %p1322_p5 = scmp.lt.u32.totalorder %s1679_s17, %s1728_s5 }
 0x34c   : > { %p1323_p11 = scmp.lt.u32.totalorder %s1321_s12, %s1317_s23  ;;  %p1325_p4 = scmp.lt.u32.totalorder %s1317_s23, %s1679_s17 }
 0x34d   : > { %p1319_p2 = pnand %p1318_p9, %p1506_p12 }
 0x34e   : > { %p1324_p1 = por %p1323_p11, %p1322_p5 }
 0x34f   : > { %p1320_p0 = pneg %p1319_p2 }
 0x350   : > { %p1326_p6 = por %p1325_p4, %p1324_p1 }
 0x352   : > { %p1327_p8 = pnand %p1326_p6, %p1320_p0 }
 0x354   : > { %1330 = shalt.err (!%p1327_p8)
}
 0x355   : > { %1163 = dma.vmem_to_hbm [thread:$0]  (%p1506_p12), %s1681_s13, 32, %s1679_s17, %s856_s27  }
 0x356 PF: > { %s882_s10 = sand.u32 1, %s1361_s18   ;;  %p1743_p10 = scmp.ne.s32.totalorder %s1733_s25, 0 }
 0x357   : > { %p1744_p13 = scmp.ge.s32.totalorder %s1373_s21, 2  ;;  %s883_s29 = scalar_lea.sflag [#allocation4], %s882_s10 }
 0x359   : > { %p1174_p3 = pnand %p1744_p13, %p1743_p10 }
 0x35b   : > { %1356 = dma.done.wait (!%p1174_p3), %s883_s29, 32  }
 0x35c   : > { %1358 = vsyncadd (!%p1174_p3), %s883_s29, 4294967264  ;;  %p19_p7 = scmp.ge.s32.totalorder %s1471_s30, 4   ;;  %s1745_s18 = smov %s1365_s19 }
 0x35d   : > { %s1746_s19 = smov %s1369_s20  ;;  %s1747_s20 = smov %s1502_s8 }
 0x35e   : > { %s1748_s21 = smov %s1471_s30  ;;  %21 = sbr.rel (!%p19_p7) target bundleno = 6 (0x6), region = 89 }
 0x365   :  { %888 = vsyncpa [#allocation3], 1 }
 0x366   :  { %890 = vsyncpa [#allocation3 + $0x1], 1 }
 0x367   :  { %891 = vsyncpa [#allocation6], 1 }
 0x368   :  { %892 = vsyncpa [#allocation4], 1 }
 0x369   :  { %894 = vsyncpa [#allocation4 + $0x1], 1 }

</bundles_post_ra>
